<compile_context>
chip_gen: v5e
topology: v5e:2x2
jax: 0.10.0
libtpu: 0.0.40
codegen_flags: <defaults>
</compile_context>

<pallas_src>
import math

import jax
import jax.numpy as jnp
from jax.experimental import pallas as pl
from jax.experimental.pallas import tpu as pltpu

C1 = 0.01 ** 2
C2 = 0.03 ** 2


def _ssim_kernel(xp_ref, yp_ref, o_ref):
    # xp_ref, yp_ref: (TG, Hp, LWo + 2) packed, reflection-padded slabs.
    # o_ref:          (TG, H,  LWo)     packed SSIM-dissimilarity output.
    H = o_ref.shape[1]
    LWo = o_ref.shape[2]

    # Fused 3x3 pools: single pass over the 9 window offsets, accumulating the
    # raw (unnormalized) sums for x, y, x*x, y*y, x*y.
    s_x = s_y = s_xx = s_yy = s_xy = None
    for di in range(3):
        for dj in range(3):
            xs = xp_ref[:, di:di + H, dj:dj + LWo].astype(jnp.float32)
            ys = yp_ref[:, di:di + H, dj:dj + LWo].astype(jnp.float32)
            if s_x is None:
                s_x, s_y = xs, ys
                s_xx, s_yy, s_xy = xs * xs, ys * ys, xs * ys
            else:
                s_x = s_x + xs
                s_y = s_y + ys
                s_xx = s_xx + xs * xs
                s_yy = s_yy + ys * ys
                s_xy = s_xy + xs * ys

    # SSIM in terms of the raw 3x3 sums (mu = S/9, sigma = (9*SS - S^2)/81),
    # with the 1/81 factors cancelled between numerator and denominator:
    #   n = (2*Sx*Sy + 81*C1) * (18*Sxy - 2*Sx*Sy + 81*C2)
    #   d = (Sx^2 + Sy^2 + 81*C1) * (9*(Sxx + Syy) - Sx^2 - Sy^2 + 81*C2)
    #   out = clip((1 - n/d) / 2, 0, 1)
    c1 = jnp.float32(81.0 * C1)
    c2 = jnp.float32(81.0 * C2)

    pxy = s_x * s_y
    qx = s_x * s_x
    qy = s_y * s_y
    two_pxy = pxy + pxy

    n = (two_pxy + c1) * (jnp.float32(18.0) * s_xy - two_pxy + c2)
    d = (qx + qy + c1) * (jnp.float32(9.0) * (s_xx + s_yy) - qx - qy + c2)

    out = jnp.float32(0.5) - jnp.float32(0.5) * (n / d)
    o_ref[...] = jnp.clip(out, 0.0, 1.0).astype(o_ref.dtype)


def _choose_group(B, Wp):
    """How many images to pack side-by-side along the lane axis.

    Prefer the smallest G with (G * Wp) % 128 == 0 (fully unmasked lane-dense
    stores), grown toward ~1-2k lanes; cap the lane width for huge images and
    just pack the whole batch when it is small.
    """
    g = 128 // math.gcd(Wp, 128)
    while 2 * g * Wp <= 2048:
        g *= 2
    if g * Wp > 4096:
        g = max(1, 4096 // Wp)  # huge images: cap lane width, accept partial mask
    return max(1, min(g, B))


def ssim(x, y):
    """SSIM dissimilarity map matching the PyTorch SSIM module. x, y: (N,C,H,W)."""
    assert x.shape == y.shape and x.ndim == 4
    N, C, H, W = x.shape
    B = N * C
    Hp, Wp = H + 2, W + 2
    itemsize = jnp.dtype(x.dtype).itemsize

    # Glue: ReflectionPad2d(1) (pure gather), collapse batch & channel.
    pad = ((0, 0), (0, 0), (1, 1), (1, 1))
    xp = jnp.pad(x, pad, mode="reflect").reshape(B, Hp, Wp)
    yp = jnp.pad(y, pad, mode="reflect").reshape(B, Hp, Wp)

    # --- lane packing: G images side-by-side, per-image lane stride Wp ---
    G = _choose_group(B, Wp)
    LWo = G * Wp       # packed output lane width (dense)
    LWi = LWo + 2      # +2 guard lanes so the three dj-shifts share width LWo

    # --- rows-of-images per grid step: fill a few hundred KiB of VMEM each ---
    NG = pl.cdiv(B, G)
    grp_in_bytes = Hp * LWi * itemsize
    TG = max(1, min(NG, (512 * 1024) // grp_in_bytes))
    if NG >= 2 and TG >= NG:
        # keep >= 2 grid steps so v7x can shard the parallel axis over both TCs
        TG = pl.cdiv(NG, 2)
    NG_pad = pl.cdiv(NG, TG) * TG
    B_pad = NG_pad * G

    if B_pad != B:
        zpad = ((0, B_pad - B), (0, 0), (0, 0))
        xp = jnp.pad(xp, zpad)
        yp = jnp.pad(yp, zpad)

    def pack(a):
        a = a.reshape(NG_pad, G, Hp, Wp).transpose(0, 2, 1, 3)
        a = a.reshape(NG_pad, Hp, LWo)
        return jnp.pad(a, ((0, 0), (0, 0), (0, 2)))  # guard lanes

    xpk = pack(xp)
    ypk = pack(yp)

    out = pl.pallas_call(
        _ssim_kernel,
        out_shape=jax.ShapeDtypeStruct((NG_pad, H, LWo), x.dtype),
        grid_spec=pltpu.PrefetchScalarGridSpec(
            num_scalar_prefetch=0,
            grid=(NG_pad // TG,),
            in_specs=[
                pl.BlockSpec((TG, Hp, LWi), lambda n: (n, 0, 0)),
                pl.BlockSpec((TG, Hp, LWi), lambda n: (n, 0, 0)),
            ],
            out_specs=pl.BlockSpec((TG, H, LWo), lambda n: (n, 0, 0)),
        ),
        compiler_params=pltpu.CompilerParams(
            dimension_semantics=("parallel",),
            vmem_limit_bytes=32 * 1024 * 1024,
        ),
    )(xpk, ypk)

    # Unpack: drop the 2 guard columns per image segment and the batch padding.
    out = out.reshape(NG_pad, H, G, Wp).transpose(0, 2, 1, 3)
    out = out.reshape(B_pad, H, Wp)[:B, :, :W]
    return out.reshape(N, C, H, W)


def _ssim_ref(x, y):
    """Pure-JAX reference (mirrors the PyTorch forward) for a sanity check."""
    pad = ((0, 0), (0, 0), (1, 1), (1, 1))
    xp = jnp.pad(x, pad, mode="reflect")
    yp = jnp.pad(y, pad, mode="reflect")

    def pool(a):
        n, c, hp, wp = a.shape
        h, w = hp - 2, wp - 2
        s = jnp.zeros((n, c, h, w), a.dtype)
        for di in range(3):
            for dj in range(3):
                s = s + a[:, :, di:di + h, dj:dj + w]
        return s / 9.0

    mu_x = pool(xp)
    mu_y = pool(yp)
    sigma_x = pool(xp ** 2) - mu_x ** 2
    sigma_y = pool(yp ** 2) - mu_y ** 2
    sigma_xy = pool(xp * yp) - mu_x * mu_y
    n = (2 * mu_x * mu_y + C1) * (2 * sigma_xy + C2)
    d = (mu_x ** 2 + mu_y ** 2 + C1) * (sigma_x + sigma_y + C2)
    return jnp.clip((1 - n / d) / 2, 0.0, 1.0)


if __name__ == "__main__":
    key = jax.random.PRNGKey(0)
    kx, ky = jax.random.split(key)
    N, C, H, W = 2, 4, 16, 16
    x = jax.random.uniform(kx, (N, C, H, W), dtype=jnp.float32)
    y = jax.random.uniform(ky, (N, C, H, W), dtype=jnp.float32)

    out = jax.block_until_ready(ssim(x, y))
    ref = jax.block_until_ready(_ssim_ref(x, y))

    assert out.shape == (N, C, H, W)
    assert jnp.allclose(out, ref, atol=1e-4, rtol=1e-4), float(
        jnp.max(jnp.abs(out - ref)))
    print("KERNEL_OK")
</pallas_src>

<mosaic_0001>
module attributes {stable_mosaic.version = 11 : i64} {
  func.func @_ssim_kernel(%arg0: i32, %arg1: memref<1x18x146xf32, #tpu.memory_space<vmem>>, %arg2: memref<1x18x146xf32, #tpu.memory_space<vmem>>, %arg3: memref<1x16x144xf32, #tpu.memory_space<vmem>>) attributes {dimension_semantics = [#tpu.dimension_semantics<parallel>], iteration_bounds = array<i64: 1>, scalar_prefetch = 0 : i64, scratch_operands = 0 : i64, tpu.core_type = #tpu.core_type<tc>, window_params = [{transform_indices = @transform_0, window_bounds = array<i64: 1, 18, 146>}, {transform_indices = @transform_1, window_bounds = array<i64: 1, 18, 146>}, {transform_indices = @transform_2, window_bounds = array<i64: 1, 16, 144>}]} {
    %c0 = arith.constant 0 : index
    %c0_0 = arith.constant 0 : index
    %c0_1 = arith.constant 0 : index
    %0 = vector.load %arg1[%c0, %c0_0, %c0_1] : memref<1x18x146xf32, #tpu.memory_space<vmem>>, vector<1x16x144xf32>
    %c0_2 = arith.constant 0 : index
    %c0_3 = arith.constant 0 : index
    %c0_4 = arith.constant 0 : index
    %1 = vector.load %arg2[%c0_2, %c0_3, %c0_4] : memref<1x18x146xf32, #tpu.memory_space<vmem>>, vector<1x16x144xf32>
    %2 = arith.mulf %0, %0 : vector<1x16x144xf32>
    %3 = arith.mulf %1, %1 : vector<1x16x144xf32>
    %4 = arith.mulf %0, %1 : vector<1x16x144xf32>
    %c0_5 = arith.constant 0 : index
    %c0_6 = arith.constant 0 : index
    %c1 = arith.constant 1 : index
    %5 = vector.load %arg1[%c0_5, %c0_6, %c1] : memref<1x18x146xf32, #tpu.memory_space<vmem>>, vector<1x16x144xf32>
    %c0_7 = arith.constant 0 : index
    %c0_8 = arith.constant 0 : index
    %c1_9 = arith.constant 1 : index
    %6 = vector.load %arg2[%c0_7, %c0_8, %c1_9] : memref<1x18x146xf32, #tpu.memory_space<vmem>>, vector<1x16x144xf32>
    %7 = arith.addf %0, %5 : vector<1x16x144xf32>
    %8 = arith.addf %1, %6 : vector<1x16x144xf32>
    %9 = arith.mulf %5, %5 : vector<1x16x144xf32>
    %10 = arith.addf %2, %9 : vector<1x16x144xf32>
    %11 = arith.mulf %6, %6 : vector<1x16x144xf32>
    %12 = arith.addf %3, %11 : vector<1x16x144xf32>
    %13 = arith.mulf %5, %6 : vector<1x16x144xf32>
    %14 = arith.addf %4, %13 : vector<1x16x144xf32>
    %c0_10 = arith.constant 0 : index
    %c0_11 = arith.constant 0 : index
    %c2 = arith.constant 2 : index
    %15 = vector.load %arg1[%c0_10, %c0_11, %c2] : memref<1x18x146xf32, #tpu.memory_space<vmem>>, vector<1x16x144xf32>
    %c0_12 = arith.constant 0 : index
    %c0_13 = arith.constant 0 : index
    %c2_14 = arith.constant 2 : index
    %16 = vector.load %arg2[%c0_12, %c0_13, %c2_14] : memref<1x18x146xf32, #tpu.memory_space<vmem>>, vector<1x16x144xf32>
    %17 = arith.addf %7, %15 : vector<1x16x144xf32>
    %18 = arith.addf %8, %16 : vector<1x16x144xf32>
    %19 = arith.mulf %15, %15 : vector<1x16x144xf32>
    %20 = arith.addf %10, %19 : vector<1x16x144xf32>
    %21 = arith.mulf %16, %16 : vector<1x16x144xf32>
    %22 = arith.addf %12, %21 : vector<1x16x144xf32>
    %23 = arith.mulf %15, %16 : vector<1x16x144xf32>
    %24 = arith.addf %14, %23 : vector<1x16x144xf32>
    %c0_15 = arith.constant 0 : index
    %c1_16 = arith.constant 1 : index
    %c0_17 = arith.constant 0 : index
    %25 = vector.load %arg1[%c0_15, %c1_16, %c0_17] : memref<1x18x146xf32, #tpu.memory_space<vmem>>, vector<1x16x144xf32>
    %c0_18 = arith.constant 0 : index
    %c1_19 = arith.constant 1 : index
    %c0_20 = arith.constant 0 : index
    %26 = vector.load %arg2[%c0_18, %c1_19, %c0_20] : memref<1x18x146xf32, #tpu.memory_space<vmem>>, vector<1x16x144xf32>
    %27 = arith.addf %17, %25 : vector<1x16x144xf32>
    %28 = arith.addf %18, %26 : vector<1x16x144xf32>
    %29 = arith.mulf %25, %25 : vector<1x16x144xf32>
    %30 = arith.addf %20, %29 : vector<1x16x144xf32>
    %31 = arith.mulf %26, %26 : vector<1x16x144xf32>
    %32 = arith.addf %22, %31 : vector<1x16x144xf32>
    %33 = arith.mulf %25, %26 : vector<1x16x144xf32>
    %34 = arith.addf %24, %33 : vector<1x16x144xf32>
    %c0_21 = arith.constant 0 : index
    %c1_22 = arith.constant 1 : index
    %c1_23 = arith.constant 1 : index
    %35 = vector.load %arg1[%c0_21, %c1_22, %c1_23] : memref<1x18x146xf32, #tpu.memory_space<vmem>>, vector<1x16x144xf32>
    %c0_24 = arith.constant 0 : index
    %c1_25 = arith.constant 1 : index
    %c1_26 = arith.constant 1 : index
    %36 = vector.load %arg2[%c0_24, %c1_25, %c1_26] : memref<1x18x146xf32, #tpu.memory_space<vmem>>, vector<1x16x144xf32>
    %37 = arith.addf %27, %35 : vector<1x16x144xf32>
    %38 = arith.addf %28, %36 : vector<1x16x144xf32>
    %39 = arith.mulf %35, %35 : vector<1x16x144xf32>
    %40 = arith.addf %30, %39 : vector<1x16x144xf32>
    %41 = arith.mulf %36, %36 : vector<1x16x144xf32>
    %42 = arith.addf %32, %41 : vector<1x16x144xf32>
    %43 = arith.mulf %35, %36 : vector<1x16x144xf32>
    %44 = arith.addf %34, %43 : vector<1x16x144xf32>
    %c0_27 = arith.constant 0 : index
    %c1_28 = arith.constant 1 : index
    %c2_29 = arith.constant 2 : index
    %45 = vector.load %arg1[%c0_27, %c1_28, %c2_29] : memref<1x18x146xf32, #tpu.memory_space<vmem>>, vector<1x16x144xf32>
    %c0_30 = arith.constant 0 : index
    %c1_31 = arith.constant 1 : index
    %c2_32 = arith.constant 2 : index
    %46 = vector.load %arg2[%c0_30, %c1_31, %c2_32] : memref<1x18x146xf32, #tpu.memory_space<vmem>>, vector<1x16x144xf32>
    %47 = arith.addf %37, %45 : vector<1x16x144xf32>
    %48 = arith.addf %38, %46 : vector<1x16x144xf32>
    %49 = arith.mulf %45, %45 : vector<1x16x144xf32>
    %50 = arith.addf %40, %49 : vector<1x16x144xf32>
    %51 = arith.mulf %46, %46 : vector<1x16x144xf32>
    %52 = arith.addf %42, %51 : vector<1x16x144xf32>
    %53 = arith.mulf %45, %46 : vector<1x16x144xf32>
    %54 = arith.addf %44, %53 : vector<1x16x144xf32>
    %c0_33 = arith.constant 0 : index
    %c2_34 = arith.constant 2 : index
    %c0_35 = arith.constant 0 : index
    %55 = vector.load %arg1[%c0_33, %c2_34, %c0_35] : memref<1x18x146xf32, #tpu.memory_space<vmem>>, vector<1x16x144xf32>
    %c0_36 = arith.constant 0 : index
    %c2_37 = arith.constant 2 : index
    %c0_38 = arith.constant 0 : index
    %56 = vector.load %arg2[%c0_36, %c2_37, %c0_38] : memref<1x18x146xf32, #tpu.memory_space<vmem>>, vector<1x16x144xf32>
    %57 = arith.addf %47, %55 : vector<1x16x144xf32>
    %58 = arith.addf %48, %56 : vector<1x16x144xf32>
    %59 = arith.mulf %55, %55 : vector<1x16x144xf32>
    %60 = arith.addf %50, %59 : vector<1x16x144xf32>
    %61 = arith.mulf %56, %56 : vector<1x16x144xf32>
    %62 = arith.addf %52, %61 : vector<1x16x144xf32>
    %63 = arith.mulf %55, %56 : vector<1x16x144xf32>
    %64 = arith.addf %54, %63 : vector<1x16x144xf32>
    %c0_39 = arith.constant 0 : index
    %c2_40 = arith.constant 2 : index
    %c1_41 = arith.constant 1 : index
    %65 = vector.load %arg1[%c0_39, %c2_40, %c1_41] : memref<1x18x146xf32, #tpu.memory_space<vmem>>, vector<1x16x144xf32>
    %c0_42 = arith.constant 0 : index
    %c2_43 = arith.constant 2 : index
    %c1_44 = arith.constant 1 : index
    %66 = vector.load %arg2[%c0_42, %c2_43, %c1_44] : memref<1x18x146xf32, #tpu.memory_space<vmem>>, vector<1x16x144xf32>
    %67 = arith.addf %57, %65 : vector<1x16x144xf32>
    %68 = arith.addf %58, %66 : vector<1x16x144xf32>
    %69 = arith.mulf %65, %65 : vector<1x16x144xf32>
    %70 = arith.addf %60, %69 : vector<1x16x144xf32>
    %71 = arith.mulf %66, %66 : vector<1x16x144xf32>
    %72 = arith.addf %62, %71 : vector<1x16x144xf32>
    %73 = arith.mulf %65, %66 : vector<1x16x144xf32>
    %74 = arith.addf %64, %73 : vector<1x16x144xf32>
    %c0_45 = arith.constant 0 : index
    %c2_46 = arith.constant 2 : index
    %c2_47 = arith.constant 2 : index
    %75 = vector.load %arg1[%c0_45, %c2_46, %c2_47] : memref<1x18x146xf32, #tpu.memory_space<vmem>>, vector<1x16x144xf32>
    %c0_48 = arith.constant 0 : index
    %c2_49 = arith.constant 2 : index
    %c2_50 = arith.constant 2 : index
    %76 = vector.load %arg2[%c0_48, %c2_49, %c2_50] : memref<1x18x146xf32, #tpu.memory_space<vmem>>, vector<1x16x144xf32>
    %77 = arith.addf %67, %75 : vector<1x16x144xf32>
    %78 = arith.addf %68, %76 : vector<1x16x144xf32>
    %79 = arith.mulf %75, %75 : vector<1x16x144xf32>
    %80 = arith.addf %70, %79 : vector<1x16x144xf32>
    %81 = arith.mulf %76, %76 : vector<1x16x144xf32>
    %82 = arith.addf %72, %81 : vector<1x16x144xf32>
    %83 = arith.mulf %75, %76 : vector<1x16x144xf32>
    %84 = arith.addf %74, %83 : vector<1x16x144xf32>
    %85 = arith.mulf %77, %78 : vector<1x16x144xf32>
    %86 = arith.mulf %77, %77 : vector<1x16x144xf32>
    %87 = arith.mulf %78, %78 : vector<1x16x144xf32>
    %88 = arith.addf %85, %85 : vector<1x16x144xf32>
    %cst = arith.constant 8.100000e-03 : f32
    %89 = vector.broadcast %cst : f32 to vector<1x16x144xf32>
    %90 = arith.addf %88, %89 : vector<1x16x144xf32>
    %cst_51 = arith.constant 1.800000e+01 : f32
    %91 = vector.broadcast %cst_51 : f32 to vector<1x16x144xf32>
    %92 = arith.mulf %91, %84 : vector<1x16x144xf32>
    %93 = arith.subf %92, %88 : vector<1x16x144xf32>
    %cst_52 = arith.constant 7.290000e-02 : f32
    %94 = vector.broadcast %cst_52 : f32 to vector<1x16x144xf32>
    %95 = arith.addf %93, %94 : vector<1x16x144xf32>
    %96 = arith.mulf %90, %95 : vector<1x16x144xf32>
    %97 = arith.addf %86, %87 : vector<1x16x144xf32>
    %cst_53 = arith.constant 8.100000e-03 : f32
    %98 = vector.broadcast %cst_53 : f32 to vector<1x16x144xf32>
    %99 = arith.addf %97, %98 : vector<1x16x144xf32>
    %100 = arith.addf %80, %82 : vector<1x16x144xf32>
    %cst_54 = arith.constant 9.000000e+00 : f32
    %101 = vector.broadcast %cst_54 : f32 to vector<1x16x144xf32>
    %102 = arith.mulf %101, %100 : vector<1x16x144xf32>
    %103 = arith.subf %102, %86 : vector<1x16x144xf32>
    %104 = arith.subf %103, %87 : vector<1x16x144xf32>
    %cst_55 = arith.constant 7.290000e-02 : f32
    %105 = vector.broadcast %cst_55 : f32 to vector<1x16x144xf32>
    %106 = arith.addf %104, %105 : vector<1x16x144xf32>
    %107 = arith.mulf %99, %106 : vector<1x16x144xf32>
    %108 = arith.divf %96, %107 : vector<1x16x144xf32>
    %cst_56 = arith.constant 5.000000e-01 : f32
    %109 = vector.broadcast %cst_56 : f32 to vector<1x16x144xf32>
    %110 = arith.mulf %109, %108 : vector<1x16x144xf32>
    %cst_57 = arith.constant 5.000000e-01 : f32
    %111 = vector.broadcast %cst_57 : f32 to vector<1x16x144xf32>
    %112 = arith.subf %111, %110 : vector<1x16x144xf32>
    %cst_58 = arith.constant 0.000000e+00 : f32
    %cst_59 = arith.constant 1.000000e+00 : f32
    %113 = vector.broadcast %cst_58 : f32 to vector<1x16x144xf32>
    %114 = arith.maximumf %113, %112 : vector<1x16x144xf32>
    %115 = vector.broadcast %cst_59 : f32 to vector<1x16x144xf32>
    %116 = arith.minimumf %115, %114 : vector<1x16x144xf32>
    %c0_60 = arith.constant 0 : index
    %c0_61 = arith.constant 0 : index
    %c0_62 = arith.constant 0 : index
    %117 = vector.load %arg3[%c0_60, %c0_61, %c0_62] : memref<1x16x144xf32, #tpu.memory_space<vmem>>, vector<1x16x144xf32>
    tpu.vector_store %arg3[%c0_60, %c0_61, %c0_62], %116 {strides = array<i32>} : memref<1x16x144xf32, #tpu.memory_space<vmem>>, vector<1x16x144xf32>,
    return
  }
  func.func @transform_0(%arg0: i32) -> (i32, i32, i32) {
    %c0_i32 = arith.constant 0 : i32
    %c0_i32_0 = arith.constant 0 : i32
    %c0_i32_1 = arith.constant 0 : i32
    return %arg0, %c0_i32, %c0_i32_0 : i32, i32, i32
  }
  func.func @transform_1(%arg0: i32) -> (i32, i32, i32) {
    %c0_i32 = arith.constant 0 : i32
    %c0_i32_0 = arith.constant 0 : i32
    %c0_i32_1 = arith.constant 0 : i32
    return %arg0, %c0_i32, %c0_i32_0 : i32, i32, i32
  }
  func.func @transform_2(%arg0: i32) -> (i32, i32, i32) {
    %c0_i32 = arith.constant 0 : i32
    %c0_i32_0 = arith.constant 0 : i32
    %c0_i32_1 = arith.constant 0 : i32
    return %arg0, %c0_i32, %c0_i32_0 : i32, i32, i32
  }
}

</mosaic_0001>

<bundles_post_ra>
// kernel: tpu_custom_call.1
= control target key start
LH: loop header
LB: loop body
LE: loop exit
PB: predicated region body
PF: predicated region fallthrough
CT: control target
= control target key end

     0   :  { %s1062_s15 = smov 127   ;;  %s2174_s0 = inlined_call_operand.vmem [shape: f32[1,18,146], index: 0, kind: input, shape index: {}]   ;;  %s2175_s1 = inlined_call_operand.vmem [shape: f32[1,18,146], index: 1, kind: input, shape index: {}]   ;;  %s2176_s2 = inlined_call_operand.hbm [shape: f32[1,16,144], index: 2, kind: output, shape index: {}]  }
   0x1   :  { %v1085_v0 = vld [vmem:[%s2175_s1] sm:$0xff]  ;;  %v1090_v1 = vld [vmem:[%s2174_s0 + $0x10] sm:$0xff] }
   0x2   :  { %v1095_v2 = vld [vmem:[%s2174_s0] sm:$0xff]  ;;  %59 = vrot.lane.b32.xlu2 %v1085_v0, %s1062_s15  ;;  %40 = vrot.lane.b32.xlu1 %v1090_v1, %s1062_s15 }
   0x3   :  { %36 = vrot.lane.b32.xlu0 %v1095_v2, %s1062_s15 }
   0x4   :  { %7 = vsyncpa [#allocation3], 0  ;;  %v1106_v3 = vld [vmem:[%s2175_s1 + $0x8] sm:$0xff]  ;;  %v1111_v4 = vld [vmem:[%s2174_s0 + $0x18] sm:$0xff]  ;;  %v1126_v6 = vmul.f32 %v1095_v2, %v1095_v2  ;;  %v1146_v9 = vmul.f32 %v1090_v1, %v1090_v1  ;;  %v1172_v14 = vmul.f32 %v1085_v0, %v1085_v0  ;;  %v1182_v15 = vmul.f32 %v1085_v0, %v1095_v2  ;;  %s1063_s26 = smov 126   ;;  %s1011_s5 = sshll.u32 %s2176_s2, 4  ;;  %s1012_s5 = int_to_ptr.hbm [resolvable:$true] %s1011_s5 }
   0x5   :  { %v1116_v5 = vld [vmem:[%s2174_s0 + $0x8] sm:$0xff]  ;;  %v1131_v7 = vld [vmem:[%s2175_s1 + $0x18] sm:$0xff]  ;;  %v1136_v8 = vld [vmem:[%s2175_s1 + $0x10] sm:$0xff]  ;;  %v1150_v10 = vmul.f32 %v1111_v4, %v1111_v4  ;;  %v1164_v12 = vmul.f32 %v1106_v3, %v1106_v3  ;;  %vm44_vm0 = vcmask 1039360   ;;  %v248_v24 = vrot.slane %v1090_v1, 1  ;;  %s1065_s6 = smov 256  }
   0x6   :  { %v1154_v11 = vmul.f32 %v1116_v5, %v1116_v5  ;;  %v1168_v13 = vmul.f32 %v1136_v8, %v1136_v8  ;;  %2188 = vst [vmem:[#allocation5_spill] sm:$0xff] %v1172_v14  ;;  %v1186_v16 = vmul.f32 %v1106_v3, %v1116_v5  ;;  %v1190_v17 = vmul.f32 %v1131_v7, %v1131_v7  ;;  %v1245_v21 = vld [vmem:[%s2174_s0] sm:$0xfe]  ;;  %v1250_v22 = vld [vmem:[%s2174_s0 + $0x8] sm:$0xfe]  ;;  %s1066_s7 = smov 16  }
   0x7   :  { %2189 = vst [vmem:[#allocation6_spill] sm:$0xff] %v1182_v15  ;;  %v1200_v18 = vmul.f32 %v1131_v7, %v1111_v4  ;;  %v1204_v19 = vmul.f32 %v1136_v8, %v1090_v1  ;;  %v247_v23 = vrot.slane %v1245_v21, 1  ;;  %v250_v25 = vrot.slane %v1250_v22, 1  ;;  %v1277_v31 = vld [vmem:[%s2174_s0 + $0x28] sm:$0x1] }
   0x8   :  { %2190 = vst [vmem:[#allocation7_spill] sm:$0xff] %v1186_v16  ;;  %v251_v26 = vrot.slane %v1111_v4, 1  ;;  %vm246_vm1 = vcmask 1046528   ;;  %v1282_v32 = vld [vmem:[%s2175_s1] sm:$0xfe]  ;;  %v255_v34 = vrot.slane %v1277_v31, 1  ;;  %v288_v54 = vmul.f32 %v1250_v22, %v1250_v22 }
   0x9   :  { %2191 = vst [vmem:[#allocation8_spill] sm:$0xff] %v1204_v19  ;;  %v1269_v29 = vsel %vm246_vm1, %v247_v23, %v248_v24  ;;  %v1287_v33 = vld [vmem:[%s2174_s0 + $0x20] sm:$0x1]  ;;  %v269_v35 = vrot.slane %v1282_v32, 1  ;;  %v270_v36 = vrot.slane %v1136_v8, 1  ;;  %v273_v45 = vrot.slane %v1131_v7, 1 }
   0xa   :  { %61 = vrot.lane.b32.xlu2 %v1106_v3, %s1062_s15  ;;  %42 = vrot.lane.b32.xlu1 %v1111_v4, %s1062_s15  ;;  %2192 = vst [vmem:[#allocation9_spill] sm:$0xff] %v1269_v29  ;;  %v1272_v30 = vsel %vm246_vm1, %v250_v25, %v251_v26  ;;  %v253_v38 = vrot.slane %v1287_v33, 1  ;;  %v1302_v39 = vsel %vm246_vm1, %v251_v26, %v255_v34  ;;  %v1313_v42 = vld [vmem:[%s2175_s1 + $0x20] sm:$0x1]  ;;  %v1318_v43 = vld [vmem:[%s2175_s1 + $0x28] sm:$0x1] }
   0xb   :  { %38 = vrot.lane.b32.xlu0 %v1116_v5, %s1062_s15  ;;  %v1305_v40 = vsel %vm246_vm1, %v269_v35, %v270_v36  ;;  %v1323_v44 = vld [vmem:[%s2175_s1 + $0x8] sm:$0xfe]  ;;  %v275_v46 = vrot.slane %v1313_v42, 1  ;;  %v277_v47 = vrot.slane %v1318_v43, 1  ;;  %v289_v55 = vmul.f32 %v1287_v33, %v1287_v33 }
   0xc   :  { %2193 = vst [vmem:[#allocation10_spill] sm:$0xff] %v1305_v40  ;;  %v1308_v41 = vsel %vm246_vm1, %v248_v24, %v253_v38  ;;  %v272_v50 = vrot.slane %v1323_v44, 1  ;;  %v287_v57 = vmul.f32 %v1245_v21, %v1245_v21  ;;  %v296_v58 = vrot.slane %v1146_v9, 1 }
   0xd   :  { %v1338_v52 = vsel %vm246_vm1, %v270_v36, %v275_v46  ;;  %v1341_v53 = vsel %vm246_vm1, %v273_v45, %v277_v47  ;;  %v298_v59 = vrot.slane %v288_v54, 1  ;;  %v299_v60 = vrot.slane %v1150_v10, 1 }
   0xe   :  { %v1348_v56 = vsel %vm246_vm1, %v272_v50, %v273_v45  ;;  %v301_v61 = vrot.slane %v289_v55, 1  ;;  %v313_v35 = vmul.f32 %v1282_v32, %v1282_v32  ;;  %v314_v36 = vmul.f32 %v1323_v44, %v1323_v44 }
   0xf   :  { %v1372_v26 = vsel %vm246_vm1, %v298_v59, %v299_v60  ;;  %v290_v45 = vmul.f32 %v1277_v31, %v1277_v31  ;;  %v322_v47 = vrot.slane %v1168_v13, 1  ;;  %v325_v50 = vrot.slane %v1190_v17, 1 }
  0x10   :  { %v1375_v34 = vsel %vm246_vm1, %v296_v58, %v301_v61  ;;  %v321_v46 = vrot.slane %v313_v35, 1  ;;  %v339_v35 = vmul.f32 %v1282_v32, %v1245_v21  ;;  %vm151_vm2 = vcmask 1031168  }
  0x11   :  { %v303_v55 = vrot.slane %v290_v45, 1  ;;  %v315_v45 = vmul.f32 %v1313_v42, %v1313_v42  ;;  %vm557_vm3 = vcmask 1045504  }
  0x12   :  { %65 = vrot.lane.b32.xlu1 %v1131_v7, %s1062_s15  ;;  %81 = vrot.lane.b32.xlu2 %v1126_v6, %s1062_s15  ;;  %v1403_v59 = vsel %vm246_vm1, %v321_v46, %v322_v47 }
  0x13   :  { %63 = vrot.lane.b32.xlu0 %v1136_v8, %s1062_s15 }
  0x1a   :  { %85 = vrot.lane.b32.xlu1 %v1146_v9, %s1062_s15  ;;  %87 = vrot.lane.b32.xlu2 %v1150_v10, %s1062_s15 }
  0x1b   :  { %83 = vrot.lane.b32.xlu0 %v1154_v11, %s1062_s15 }
  0x22   :  { %105 = vrot.lane.b32.xlu1 %v1164_v12, %s1062_s15  ;;  %107 = vrot.lane.b32.xlu2 %v1168_v13, %s1062_s15 }
  0x23   :  { %103 = vrot.lane.b32.xlu0 %v1172_v14, %s1062_s15 }
  0x2a   :  { %125 = vrot.lane.b32.xlu1 %v1182_v15, %s1062_s15  ;;  %127 = vrot.lane.b32.xlu2 %v1186_v16, %s1062_s15 }
  0x2b   :  { %109 = vrot.lane.b32.xlu0 %v1190_v17, %s1062_s15 }
  0x32   :  { %131 = vrot.lane.b32.xlu1 %v1200_v18, %s1062_s15  ;;  %143 = vrot.lane.b32.xlu2 %v1095_v2, %s1063_s26 }
  0x33   :  { %129 = vrot.lane.b32.xlu0 %v1204_v19, %s1062_s15 }
  0x3a   :  { %147 = vrot.lane.b32.xlu1 %v1090_v1, %s1063_s26  ;;  %149 = vrot.lane.b32.xlu2 %v1111_v4, %s1063_s26 }
  0x3b   :  { %145 = vrot.lane.b32.xlu0 %v1116_v5, %s1063_s26 }
  0x42   :  { %164 = vrot.lane.b32.xlu1 %v1106_v3, %s1063_s26  ;;  %166 = vrot.lane.b32.xlu2 %v1136_v8, %s1063_s26 }
  0x43   :  { %162 = vrot.lane.b32.xlu0 %v1085_v0, %s1063_s26 }
  0x4a   :  { %180 = vrot.lane.b32.xlu1 %v1126_v6, %s1063_s26  ;;  %182 = vrot.lane.b32.xlu2 %v1154_v11, %s1063_s26 }
  0x4b   :  { %168 = vrot.lane.b32.xlu0 %v1131_v7, %s1063_s26 }
  0x52   :  { %186 = vrot.lane.b32.xlu1 %v1150_v10, %s1063_s26  ;;  %198 = vrot.lane.b32.xlu2 %v1172_v14, %s1063_s26 }
  0x53   :  { %184 = vrot.lane.b32.xlu0 %v1146_v9, %s1063_s26 }
  0x5a   :  { %202 = vrot.lane.b32.xlu1 %v1168_v13, %s1063_s26  ;;  %204 = vrot.lane.b32.xlu2 %v1190_v17, %s1063_s26 }
  0x5b   :  { %200 = vrot.lane.b32.xlu0 %v1164_v12, %s1063_s26 }
  0x5c   :  { %v60_v20 = vpop.permute.xlu2 %59 }
  0x62   :  { %218 = vrot.lane.b32.xlu1 %v1186_v16, %s1063_s26  ;;  %220 = vrot.lane.b32.xlu2 %v1204_v19, %s1063_s26 }
  0x63   :  { %216 = vrot.lane.b32.xlu0 %v1182_v15, %s1063_s26 }
  0x64   :  { %v1262_v27 = vpop.permute.xlu2 %61 }
  0x65   :  { %v1266_v28 = vsel %vm44_vm0, %v60_v20, %v1262_v27  ;;  %v295_v20 = vrot.slane %v287_v57, 1 }
  0x67   :  { %v1382_v38 = vsel %vm246_vm1, %v295_v20, %v296_v58  ;;  %v316_v20 = vmul.f32 %v1318_v43, %v1318_v43 }
  0x69   :  { %v329_v46 = vrot.slane %v316_v20, 1 }
  0x6a   :  { %365 = vrot.lane.b32.xlu1 %v1269_v29, %s1062_s15  ;;  %367 = vrot.lane.b32.xlu2 %v1272_v30, %s1062_s15 }
  0x6b   :  { %222 = vrot.lane.b32.xlu0 %v1200_v18, %s1063_s26  ;;  %v1433_v14 = vsel %vm246_vm1, %v325_v50, %v329_v46 }
  0x6c   :  { %v1298_v37 = vpop.permute.xlu2 %81 }
  0x72   :  { %371 = vrot.lane.b32.xlu1 %v1302_v39, %s1062_s15  ;;  %383 = vrot.lane.b32.xlu2 %v1305_v40, %s1062_s15 }
  0x73   :  { %369 = vrot.lane.b32.xlu0 %v1308_v41, %s1062_s15 }
  0x74   :  { %v41_v48 = vpop.permute.xlu1 %40  ;;  %v1334_v49 = vpop.permute.xlu2 %87 }
  0x75   :  { %v37_v51 = vpop.permute.xlu0 %36 }
  0x7a   :  { %387 = vrot.lane.b32.xlu1 %v1338_v52, %s1062_s15  ;;  %389 = vrot.lane.b32.xlu2 %v1341_v53, %s1062_s15 }
  0x7b   :  { %385 = vrot.lane.b32.xlu0 %v1348_v56, %s1062_s15 }
  0x7c   :  { %v43_v62 = vpop.permute.xlu1 %42  ;;  %v1360_v63 = vpop.permute.xlu2 %107 }
  0x7d   :  { %v1363_v23 = vsel %vm44_vm0, %v41_v48, %v43_v62  ;;  %v1365_v24 = vpop.permute.xlu0 %38  ;;  %v324_v48 = vrot.slane %v314_v36, 1  ;;  %v1413_v36 = vsel %vm246_vm1, %v299_v60, %v303_v55  ;;  %v327_v60 = vrot.slane %v315_v45, 1 }
  0x7e   :  { %v1369_v25 = vsel %vm44_vm0, %v37_v51, %v1365_v24  ;;  %v342_v45 = vmul.f32 %v1318_v43, %v1277_v31 }
  0x7f   :  { %v1406_v61 = vsel %vm246_vm1, %v324_v48, %v325_v50  ;;  %v347_v48 = vrot.slane %v339_v35, 1  ;;  %v341_v35 = vmul.f32 %v1313_v42, %v1287_v33  ;;  %v351_v33 = vrot.slane %v1200_v18, 1 }
  0x80   :  { %v355_v42 = vrot.slane %v342_v45, 1 }
  0x81   :  { %v353_v31 = vrot.slane %v341_v35, 1 }
  0x82   :  { %403 = vrot.lane.b32.xlu1 %v1372_v26, %s1062_s15  ;;  %405 = vrot.lane.b32.xlu2 %v1375_v34, %s1062_s15 }
  0x83   :  { %401 = vrot.lane.b32.xlu0 %v1382_v38, %s1062_s15 }
  0x84   :  { %v1394_v51 = vpop.permute.xlu1 %65  ;;  %v1396_v54 = vpop.permute.xlu2 %127 }
  0x85   :  { %v64_v57 = vpop.permute.xlu0 %63 }
  0x86   :  { %v1400_v58 = vsel %vm44_vm0, %v64_v57, %v1394_v51  ;;  %v348_v57 = vrot.slane %v1204_v19, 1  ;;  %v340_v19 = vmul.f32 %v1323_v44, %v1250_v22 }
  0x88   :  { %v1436_v20 = vsel %vm246_vm1, %v347_v48, %v348_v57  ;;  %v350_v50 = vrot.slane %v340_v19, 1  ;;  %v1462_v48 = vsel %vm246_vm1, %v348_v57, %v353_v31 }
  0x8a   :  { %419 = vrot.lane.b32.xlu1 %v1403_v59, %s1062_s15  ;;  %421 = vrot.lane.b32.xlu2 %v1406_v61, %s1062_s15  ;;  %v1471_v35 = vsel %vm246_vm1, %v350_v50, %v351_v33 }
  0x8b   :  { %407 = vrot.lane.b32.xlu0 %v1413_v36, %s1062_s15 }
  0x8c   :  { %v86_v21 = vpop.permute.xlu1 %85  ;;  %v144_v32 = vpop.permute.xlu2 %143 }
  0x8d   :  { %v1426_v55 = vsel %vm44_vm0, %v86_v21, %v1334_v49  ;;  %v84_v15 = vpop.permute.xlu0 %83  ;;  %v1443_v21 = vsel %vm246_vm1, %v322_v47, %v327_v60 }
  0x8e   :  { %v1430_v16 = vsel %vm44_vm0, %v1298_v37, %v84_v15  ;;  %v54_v37 = vadd.f32 %v43_v62, %v1111_v4  ;;  %v1465_v62 = vsel %vm246_vm1, %v351_v33, %v355_v42  ;;  %v96_v31 = vadd.f32 %v84_v15, %v1154_v11 }
  0x8f   :  { %v53_v11 = vadd.f32 %v1363_v23, %v1090_v1  ;;  %v52_v15 = vadd.f32 %v1365_v24, %v1116_v5 }
  0x92   :  { %425 = vrot.lane.b32.xlu1 %v1433_v14, %s1062_s15  ;;  %437 = vrot.lane.b32.xlu2 %v1436_v20, %s1062_s15 }
  0x93   :  { %423 = vrot.lane.b32.xlu0 %v1443_v21, %s1062_s15 }
  0x94   :  { %v1455_v43 = vpop.permute.xlu1 %105  ;;  %v150_v47 = vpop.permute.xlu2 %149 }
  0x95   :  { %v104_v22 = vpop.permute.xlu0 %103  ;;  %v161_v44 = vadd.f32 %v150_v47, %v54_v37 }
  0x96   :  { %v1459_v46 = vsel %vm44_vm0, %v104_v22, %v1455_v43 }
  0x97   :  { %v1468_v60 = vadd.f32 %v1302_v39, %v161_v44 }
  0x99   :  { %2194 = vst [vmem:[#allocation11_spill] sm:$0xff] %v1468_v60 }
  0x9a   :  { %441 = vrot.lane.b32.xlu1 %v1462_v48, %s1062_s15  ;;  %443 = vrot.lane.b32.xlu2 %v1465_v62, %s1062_s15 }
  0x9b   :  { %439 = vrot.lane.b32.xlu0 %v1471_v35, %s1062_s15 }
  0x9c   :  { %v126_v19 = vpop.permute.xlu1 %125  ;;  %v167_v57 = vpop.permute.xlu2 %166 }
  0x9d   :  { %v110_v45 = vpop.permute.xlu0 %109  ;;  %v1481_v37 = vsel %vm44_vm0, %v126_v19, %v1396_v54 }
  0x9e   :  { %v1485_v33 = vsel %vm44_vm0, %v1360_v63, %v110_v45  ;;  %v120_v5 = vadd.f32 %v110_v45, %v1190_v17  ;;  %v75_v45 = vadd.f32 %v1400_v58, %v1136_v8 }
  0xa2   :  { %457 = vrot.lane.b32.xlu1 %v1272_v30, %s1063_s26  ;;  %459 = vrot.lane.b32.xlu2 %v1308_v41, %s1063_s26 }
  0xa3   :  { %455 = vrot.lane.b32.xlu0 %v1269_v29, %s1063_s26 }
  0xa4   :  { %v1494_v42 = vpop.permute.xlu1 %131  ;;  %v183_v50 = vpop.permute.xlu2 %182 }
  0xa5   :  { %v130_v22 = vpop.permute.xlu0 %129  ;;  %v195_v44 = vadd.f32 %v183_v50, %v96_v31 }
  0xa6   :  { %v1498_v63 = vsel %vm44_vm0, %v130_v22, %v1494_v42 }
  0xa7   :  { %2195 = vst [vmem:[#allocation12_spill] sm:$0xff] %v1498_v63  ;;  %v1501_v19 = vadd.f32 %v1372_v26, %v195_v44  ;;  %v51_v44 = vadd.f32 %v1369_v25, %v1095_v2  ;;  %v74_v2 = vadd.f32 %v1262_v27, %v1106_v3  ;;  %v95_v27 = vadd.f32 %v1430_v16, %v1126_v6 }
  0xa8   :  { %v98_v6 = vadd.f32 %v1334_v49, %v1150_v10 }
  0xa9   :  { %2196 = vst [vmem:[#allocation13_spill] sm:$0xff] %v1501_v19 }
  0xaa   :  { %473 = vrot.lane.b32.xlu1 %v1305_v40, %s1063_s26  ;;  %475 = vrot.lane.b32.xlu2 %v1348_v56, %s1063_s26 }
  0xab   :  { %461 = vrot.lane.b32.xlu0 %v1302_v39, %s1063_s26 }
  0xac   :  { %v148_v31 = vpop.permute.xlu1 %147  ;;  %v1513_v22 = vpop.permute.xlu2 %198 }
  0xad   :  { %v146_v19 = vpop.permute.xlu0 %145  ;;  %v153_v40 = vsel %vm151_vm2, %v148_v31, %v150_v47 }
  0xae   :  { %v152_v60 = vsel %vm151_vm2, %v144_v32, %v146_v19  ;;  %v159_v63 = vadd.f32 %v146_v19, %v52_v15  ;;  %v160_v29 = vadd.f32 %v153_v40, %v53_v11 }
  0xaf   :  { %v1519_v39 = vadd.f32 %v152_v60, %v51_v44 }
  0xb0   :  { %v1522_v23 = vadd.f32 %v1308_v41, %v160_v29  ;;  %v73_v29 = vadd.f32 %v1266_v28, %v1085_v0  ;;  %v76_v0 = vadd.f32 %v1394_v51, %v1131_v7  ;;  %v262_v16 = vadd.f32 %v1272_v30, %v159_v63  ;;  %v1590_v30 = vld [vmem:[%s2174_s0] sm:$0xfc] }
  0xb1   :  { %v559_v63 = vrot.slane %v1090_v1, 2 }
  0xb2   :  { %479 = vrot.lane.b32.xlu1 %v1341_v53, %s1063_s26  ;;  %491 = vrot.lane.b32.xlu2 %v1382_v38, %s1063_s26 }
  0xb3   :  { %477 = vrot.lane.b32.xlu0 %v1338_v52, %s1063_s26 }
  0xb4   :  { %v165_v40 = vpop.permute.xlu1 %164  ;;  %v205_v24 = vpop.permute.xlu2 %204 }
  0xb5   :  { %v163_v41 = vpop.permute.xlu0 %162  ;;  %v177_v25 = vadd.f32 %v165_v40, %v74_v2  ;;  %v215_v32 = vadd.f32 %v205_v24, %v120_v5 }
  0xb6   :  { %v170_v47 = vsel %vm151_vm2, %v163_v41, %v165_v40 }
  0xb7   :  { %v1536_v60 = vadd.f32 %v170_v47, %v73_v29  ;;  %v1539_v19 = vadd.f32 %v1348_v56, %v177_v25  ;;  %v1542_v3 = vadd.f32 %v1433_v14, %v215_v32  ;;  %v119_v25 = vadd.f32 %v1485_v33, %v1168_v13 }
  0xba   :  { %495 = vrot.lane.b32.xlu1 %v1375_v34, %s1063_s26  ;;  %497 = vrot.lane.b32.xlu2 %v1413_v36, %s1063_s26 }
  0xbb   :  { %493 = vrot.lane.b32.xlu0 %v1372_v26, %s1063_s26 }
  0xbc   :  { %v181_v28 = vpop.permute.xlu1 %180  ;;  %v1554_v56 = vpop.permute.xlu2 %220 }
  0xbd   :  { %v169_v11 = vpop.permute.xlu0 %168  ;;  %v188_v15 = vsel %vm151_vm2, %v181_v28, %v183_v50 }
  0xbe   :  { %v171_v31 = vsel %vm151_vm2, %v167_v57, %v169_v11  ;;  %v179_v44 = vadd.f32 %v169_v11, %v76_v0  ;;  %v194_v2 = vadd.f32 %v188_v15, %v95_v27  ;;  %v2197_v0 = vld [vmem:[#allocation5_spill] sm:$0xff] }
  0xbf   :  { %v1560_v26 = vadd.f32 %v171_v31, %v75_v45  ;;  %v117_v27 = vadd.f32 %v1459_v46, %v2197_v0  ;;  %v1624_v46 = vld [vmem:[%s2174_s0 + $0x28] sm:$0x3]  ;;  %v1672_v0 = vld [vmem:[%s2175_s1 + $0x8] sm:$0xfc] }
  0xc0   :  { %v1563_v51 = vadd.f32 %v1382_v38, %v194_v2  ;;  %v97_v38 = vadd.f32 %v1426_v55, %v1146_v9  ;;  %v558_v55 = vrot.slane %v1590_v30, 2  ;;  %2199 = vst [vmem:[#allocation14_spill] sm:$0xff] %v1624_v46  ;;  %v562_v2 = vrot.slane %v1111_v4, 2 }
  0xc2   :  { %511 = vrot.lane.b32.xlu1 %v1406_v61, %s1063_s26  ;;  %513 = vrot.lane.b32.xlu2 %v1443_v21, %s1063_s26 }
  0xc3   :  { %509 = vrot.lane.b32.xlu0 %v1403_v59, %s1063_s26 }
  0xc4   :  { %v187_v58 = vpop.permute.xlu1 %186  ;;  %v1574_v57 = vpop.permute.xlu2 %367 }
  0xc5   :  { %v185_v50 = vpop.permute.xlu0 %184  ;;  %v197_v5 = vadd.f32 %v187_v58, %v98_v6  ;;  %v1579_v40 = vadd.f32 %v1574_v57, %v262_v16  ;;  %v566_v16 = vrot.slane %v1624_v46, 2 }
  0xc6   :  { %v189_v29 = vsel %vm151_vm2, %v185_v50, %v187_v58  ;;  %v2201_v50 = vld [vmem:[#allocation6_spill] sm:$0xff] }
  0xc7   :  { %v1582_v41 = vadd.f32 %v189_v29, %v97_v38  ;;  %v1585_v49 = vadd.f32 %v1413_v36, %v197_v5  ;;  %v118_v36 = vadd.f32 %v1455_v43, %v1164_v12  ;;  %v1614_v12 = vsel %vm557_vm3, %v558_v55, %v559_v63  ;;  %v1619_v43 = vld [vmem:[%s2174_s0 + $0x20] sm:$0x3] }
  0xc8   :  { %2198 = vst [vmem:[#allocation5_spill] sm:$0xff] %v1619_v43  ;;  %v564_v6 = vrot.slane %v1619_v43, 2  ;;  %v139_v5 = vadd.f32 %v1481_v37, %v2201_v50 }
  0xca   :  { %527 = vrot.lane.b32.xlu1 %v1436_v20, %s1063_s26  ;;  %529 = vrot.lane.b32.xlu2 %v1471_v35, %s1063_s26 }
  0xcb   :  { %515 = vrot.lane.b32.xlu0 %v1433_v14, %s1063_s26 }
  0xcc   :  { %v203_v32 = vpop.permute.xlu1 %202  ;;  %v1604_v47 = vpop.permute.xlu2 %383 }
  0xcd   :  { %v201_v28 = vpop.permute.xlu0 %200  ;;  %v207_v14 = vsel %vm151_vm2, %v203_v32, %v205_v24  ;;  %v2200_v24 = vld [vmem:[#allocation7_spill] sm:$0xff] }
  0xce   :  { %v206_v45 = vsel %vm151_vm2, %v1513_v22, %v201_v28  ;;  %v213_v1 = vadd.f32 %v201_v28, %v118_v36  ;;  %v214_v11 = vadd.f32 %v207_v14, %v119_v25  ;;  %v1632_v22 = vld [vmem:[%s2174_s0 + $0x8] sm:$0xfc]  ;;  %v140_v31 = vadd.f32 %v1396_v54, %v2200_v24 }
  0xcf   :  { %v1611_v15 = vadd.f32 %v206_v45, %v117_v27  ;;  %v561_v54 = vrot.slane %v1632_v22, 2  ;;  %v1661_v25 = vsel %vm557_vm3, %v562_v2, %v566_v16  ;;  %v1677_v27 = vld [vmem:[%s2175_s1 + $0x20] sm:$0x3]  ;;  %v583_v28 = vrot.slane %v1672_v0, 2  ;;  %v2203_v16 = vld [vmem:[#allocation8_spill] sm:$0xff] }
  0xd0   :  { %v1627_v33 = vadd.f32 %v1443_v21, %v214_v11  ;;  %v286_v21 = vadd.f32 %v1341_v53, %v179_v44  ;;  %v1658_v44 = vsel %vm557_vm3, %v559_v63, %v564_v6  ;;  %v1682_v63 = vld [vmem:[%s2175_s1] sm:$0xfc]  ;;  %v584_v14 = vrot.slane %v1131_v7, 2 }
  0xd1   :  { %v1667_v37 = vsel %vm557_vm3, %v561_v54, %v562_v2  ;;  %v586_v45 = vrot.slane %v1677_v27, 2  ;;  %v142_v11 = vadd.f32 %v1494_v42, %v1200_v18  ;;  %v580_v6 = vrot.slane %v1682_v63, 2 }
  0xd2   :  { %533 = vrot.lane.b32.xlu1 %v1465_v62, %s1063_s26  ;;  %676 = vrot.lane.b32.xlu2 %v1614_v12, %s1062_s15 }
  0xd3   :  { %531 = vrot.lane.b32.xlu0 %v1462_v48, %s1063_s26 }
  0xd4   :  { %v219_v58 = vpop.permute.xlu1 %218  ;;  %v1646_v38 = vpop.permute.xlu2 %389 }
  0xd5   :  { %v217_v29 = vpop.permute.xlu0 %216  ;;  %v231_v55 = vadd.f32 %v219_v58, %v140_v31  ;;  %v1652_v36 = vadd.f32 %v1646_v38, %v286_v21  ;;  %v2202_v31 = vld [vmem:[#allocation9_spill] sm:$0xff] }
  0xd6   :  { %v224_v53 = vsel %vm151_vm2, %v217_v29, %v219_v58  ;;  %v261_v21 = vadd.f32 %v2202_v31, %v1519_v39  ;;  %v2204_v58 = vld [vmem:[#allocation12_spill] sm:$0xff]  ;;  %v598_v39 = vmul.f32 %v1590_v30, %v1590_v30  ;;  %v610_v31 = vrot.slane %v1150_v10, 2 }
  0xd7   :  { %v1655_v4 = vadd.f32 %v224_v53, %v139_v5  ;;  %v1664_v32 = vadd.f32 %v1471_v35, %v231_v55  ;;  %v581_v35 = vrot.slane %v1136_v8, 2  ;;  %v141_v8 = vadd.f32 %v2204_v58, %v2203_v16 }
  0xd8   :  { %v1714_v55 = vsel %vm557_vm3, %v583_v28, %v584_v14  ;;  %v606_v28 = vrot.slane %v598_v39, 2 }
  0xd9   :  { %v1717_v53 = vsel %vm557_vm3, %v581_v35, %v586_v45  ;;  %v336_v45 = vadd.f32 %v1406_v61, %v213_v1 }
  0xda   :  { %680 = vrot.lane.b32.xlu1 %v1658_v44, %s1062_s15  ;;  %682 = vrot.lane.b32.xlu2 %v1661_v25, %s1062_s15 }
  0xdb   :  { %678 = vrot.lane.b32.xlu0 %v1667_v37, %s1062_s15 }
  0xdc   :  { %v366_v24 = vpop.permute.xlu1 %365  ;;  %v1698_v2 = vpop.permute.xlu2 %405 }
  0xdd   :  { %v223_v54 = vpop.permute.xlu0 %222  ;;  %v373_v7 = vsel %vm44_vm0, %v366_v24, %v1574_v57  ;;  %v599_v57 = vmul.f32 %v1632_v22, %v1632_v22  ;;  %v1722_v24 = vsel %vm557_vm3, %v580_v6, %v581_v35  ;;  %v607_v35 = vrot.slane %v1146_v9, 2 }
  0xde   :  { %v225_v50 = vsel %vm151_vm2, %v1554_v56, %v223_v54  ;;  %v233_v5 = vadd.f32 %v223_v54, %v142_v11  ;;  %v1707_v42 = vadd.f32 %v373_v7, %v261_v21  ;;  %v1727_v56 = vld [vmem:[%s2175_s1 + $0x28] sm:$0x3]  ;;  %v2205_v54 = vld [vmem:[#allocation11_spill] sm:$0xff]  ;;  %v601_v9 = vmul.f32 %v1624_v46, %v1624_v46  ;;  %s1064_s1 = smov [#allocation2]  }
  0xdf   :  { %v1711_v29 = vadd.f32 %v225_v50, %v141_v8  ;;  %v609_v11 = vrot.slane %v599_v57, 2  ;;  %v588_v58 = vrot.slane %v1727_v56, 2  ;;  %v1754_v10 = vsel %vm557_vm3, %v606_v28, %v607_v35 }
  0xe0   :  { %v624_v57 = vmul.f32 %v1682_v63, %v1682_v63 }
  0xe1   :  { %v1757_v1 = vsel %vm557_vm3, %v609_v11, %v610_v31  ;;  %v633_v11 = vrot.slane %v1168_v13, 2 }
  0xe2   :  { %696 = vrot.lane.b32.xlu1 %v1714_v55, %s1062_s15  ;;  %698 = vrot.lane.b32.xlu2 %v1717_v53, %s1062_s15  ;;  %v632_v28 = vrot.slane %v624_v57, 2 }
  0xe3   :  { %694 = vrot.lane.b32.xlu0 %v1722_v24, %s1062_s15 }
  0xe4   :  { %v372_v21 = vpop.permute.xlu1 %371  ;;  %v1738_v6 = vpop.permute.xlu2 %421 }
  0xe5   :  { %v370_v8 = vpop.permute.xlu0 %369  ;;  %v1742_v7 = vadd.f32 %v372_v21, %v2205_v54  ;;  %v1745_v50 = vadd.f32 %v1738_v6, %v336_v45  ;;  %v1762_v45 = vsel %vm557_vm3, %v584_v14, %v588_v58  ;;  %v285_v14 = vadd.f32 %v1338_v52, %v1560_v26 }
  0xe6   :  { %v374_v39 = vsel %vm44_vm0, %v370_v8, %v372_v21  ;;  %2207 = vst [vmem:[#allocation6_spill] sm:$0xff] %v1762_v45  ;;  %v600_v21 = vmul.f32 %v1619_v43, %v1619_v43  ;;  %v1792_v26 = vsel %vm557_vm3, %v632_v28, %v633_v11 }
  0xe7   :  { %2206 = vst [vmem:[#allocation7_spill] sm:$0xff] %v1745_v50  ;;  %v1751_v61 = vadd.f32 %v374_v39, %v1522_v23  ;;  %v614_v23 = vrot.slane %v601_v9, 2  ;;  %v2208_v50 = vld [vmem:[#allocation10_spill] sm:$0xff] }
  0xe8   :  { %v612_v54 = vrot.slane %v600_v21, 2  ;;  %v283_v43 = vadd.f32 %v2208_v50, %v1536_v60  ;;  %v626_v60 = vmul.f32 %v1677_v27, %v1677_v27 }
  0xe9   :  { %v1787_v46 = vsel %vm557_vm3, %v610_v31, %v614_v23  ;;  %v636_v31 = vrot.slane %v1190_v17, 2 }
  0xea   :  { %712 = vrot.lane.b32.xlu1 %v1754_v10, %s1062_s15  ;;  %714 = vrot.lane.b32.xlu2 %v1757_v1, %s1062_s15  ;;  %v638_v50 = vrot.slane %v626_v60, 2 }
  0xeb   :  { %700 = vrot.lane.b32.xlu0 %v1762_v45, %s1062_s15 }
  0xec   :  { %v388_v8 = vpop.permute.xlu1 %387  ;;  %v1775_v58 = vpop.permute.xlu2 %437 }
  0xed   :  { %v386_v39 = vpop.permute.xlu0 %385  ;;  %v392_v9 = vsel %vm44_vm0, %v388_v8, %v1646_v38  ;;  %v627_v38 = vmul.f32 %v1727_v56, %v1727_v56  ;;  %v2209_v8 = vld [vmem:[#allocation13_spill] sm:$0xff] }
  0xee   :  { %v391_v45 = vsel %vm44_vm0, %v1604_v47, %v386_v39  ;;  %v398_v57 = vadd.f32 %v386_v39, %v1539_v19  ;;  %v1784_v13 = vadd.f32 %v392_v9, %v285_v14  ;;  %v1799_v47 = vsel %vm557_vm3, %v607_v35, %v612_v54 }
  0xef   :  { %v1789_v52 = vadd.f32 %v391_v45, %v283_v43  ;;  %v625_v19 = vmul.f32 %v1672_v0, %v1672_v0  ;;  %v364_v43 = vadd.f32 %v1465_v62, %v233_v5  ;;  %v640_v45 = vrot.slane %v627_v38, 2 }
  0xf0   :  { %v1821_v62 = vsel %vm557_vm3, %v633_v11, %v638_v50  ;;  %v335_v11 = vadd.f32 %v1403_v59, %v1611_v15 }
  0xf1   :  { %v635_v23 = vrot.slane %v625_v19, 2  ;;  %v1824_v17 = vsel %vm557_vm3, %v636_v31, %v640_v45  ;;  %v311_v19 = vadd.f32 %v1375_v34, %v1582_v41 }
  0xf2   :  { %718 = vrot.lane.b32.xlu1 %v1787_v46, %s1062_s15  ;;  %730 = vrot.lane.b32.xlu2 %v1792_v26, %s1062_s15 }
  0xf3   :  { %716 = vrot.lane.b32.xlu0 %v1799_v47, %s1062_s15  ;;  %v1827_v5 = vsel %vm557_vm3, %v635_v23, %v636_v31 }
  0xf4   :  { %v404_v35 = vpop.permute.xlu1 %403  ;;  %v444_v21 = vpop.permute.xlu2 %443 }
  0xf5   :  { %v402_v28 = vpop.permute.xlu0 %401  ;;  %v1812_v14 = vadd.f32 %v404_v35, %v2209_v8  ;;  %v1814_v54 = vadd.f32 %v444_v21, %v364_v43  ;;  %v361_v8 = vadd.f32 %v1436_v20, %v1655_v4 }
  0xf6   :  { %v409_v39 = vsel %vm44_vm0, %v402_v28, %v404_v35 }
  0xf7   :  { %v1818_v9 = vadd.f32 %v409_v39, %v1563_v51 }
  0xfa   :  { %734 = vrot.lane.b32.xlu1 %v1821_v62, %s1062_s15  ;;  %736 = vrot.lane.b32.xlu2 %v1824_v17, %s1062_s15 }
  0xfb   :  { %732 = vrot.lane.b32.xlu0 %v1827_v5, %s1062_s15 }
  0xfc   :  { %v420_v51 = vpop.permute.xlu1 %419  ;;  %v460_v60 = vpop.permute.xlu2 %459 }
  0xfd   :  { %v408_v38 = vpop.permute.xlu0 %407  ;;  %v427_v43 = vsel %vm44_vm0, %v420_v51, %v1738_v6 }
  0xfe   :  { %v410_v31 = vsel %vm44_vm0, %v1698_v2, %v408_v38  ;;  %v418_v50 = vadd.f32 %v408_v38, %v1585_v49  ;;  %v1844_v45 = vadd.f32 %v427_v43, %v335_v11 }
  0xff   :  { %v1846_v35 = vadd.f32 %v410_v31, %v311_v19 }
 0x102   :  { %804 = vrot.lane.b32.xlu1 %v1757_v1, %s1063_s26  ;;  %806 = vrot.lane.b32.xlu2 %v1799_v47, %s1063_s26 }
 0x103   :  { %802 = vrot.lane.b32.xlu0 %v1754_v10, %s1063_s26 }
 0x104   :  { %v426_v34 = vpop.permute.xlu1 %425  ;;  %v476_v59 = vpop.permute.xlu2 %475 }
 0x105   :  { %v424_v41 = vpop.permute.xlu0 %423  ;;  %v1855_v15 = vadd.f32 %v426_v34, %v1542_v3  ;;  %v488_v49 = vadd.f32 %v476_v59, %v398_v57  ;;  %v363_v57 = vadd.f32 %v1462_v48, %v1711_v29 }
 0x106   :  { %v428_v2 = vsel %vm44_vm0, %v424_v41, %v426_v34 }
 0x107   :  { %v1859_v6 = vadd.f32 %v428_v2, %v1627_v33  ;;  %v1862_v23 = vadd.f32 %v1714_v55, %v488_v49 }
 0x10a   :  { %820 = vrot.lane.b32.xlu1 %v1792_v26, %s1063_s26  ;;  %822 = vrot.lane.b32.xlu2 %v1827_v5, %s1063_s26 }
 0x10b   :  { %808 = vrot.lane.b32.xlu0 %v1787_v46, %s1063_s26 }
 0x10c   :  { %v442_v3 = vpop.permute.xlu1 %441  ;;  %v1872_v28 = vpop.permute.xlu2 %491 }
 0x10d   :  { %v440_v33 = vpop.permute.xlu0 %439  ;;  %v446_v39 = vsel %vm44_vm0, %v442_v3, %v444_v21  ;;  %v650_v3 = vmul.f32 %v1682_v63, %v1590_v30 }
 0x10e   :  { %v445_v51 = vsel %vm44_vm0, %v1775_v58, %v440_v33  ;;  %v452_v11 = vadd.f32 %v440_v33, %v1664_v32  ;;  %v1880_v38 = vadd.f32 %v446_v39, %v363_v57  ;;  %v662_v33 = vrot.slane %v1200_v18, 2  ;;  %v2210_v39 = vld [vmem:[#allocation14_spill] sm:$0xff] }
 0x10f   :  { %v1882_v19 = vadd.f32 %v445_v51, %v361_v8  ;;  %v2211_v51 = vld [vmem:[#allocation6_spill] sm:$0xff] }
 0x112   :  { %826 = vrot.lane.b32.xlu1 %v1824_v17, %s1063_s26  ;;  %766 = vrot.lane.b32.xlu2 %v1614_v12, %s1063_s26 }
 0x113   :  { %824 = vrot.lane.b32.xlu0 %v1821_v62, %s1063_s26 }
 0x114   :  { %v458_v20 = vpop.permute.xlu1 %457  ;;  %v498_v48 = vpop.permute.xlu2 %497 }
 0x115   :  { %v456_v4 = vpop.permute.xlu0 %455  ;;  %v470_v29 = vadd.f32 %v458_v20, %v1579_v40  ;;  %v508_v58 = vadd.f32 %v498_v48, %v418_v50 }
 0x116   :  { %v463_v32 = vsel %vm151_vm2, %v456_v4, %v458_v20  ;;  %v2212_v4 = vld [vmem:[#allocation5_spill] sm:$0xff] }
 0x117   :  { %v1893_v21 = vadd.f32 %v463_v32, %v1707_v42  ;;  %v1896_v43 = vadd.f32 %v1667_v37, %v470_v29  ;;  %v1899_v31 = vadd.f32 %v1787_v46, %v508_v58  ;;  %v651_v42 = vmul.f32 %v1672_v0, %v1632_v22 }
 0x118   :  { %v658_v0 = vrot.slane %v650_v3, 2  ;;  %v652_v29 = vmul.f32 %v1677_v27, %v2212_v4 }
 0x119   :  { %v661_v57 = vrot.slane %v651_v42, 2 }
 0x11a   :  { %770 = vrot.lane.b32.xlu1 %v1658_v44, %s1063_s26  ;;  %772 = vrot.lane.b32.xlu2 %v1661_v25, %s1063_s26  ;;  %v664_v58 = vrot.slane %v652_v29, 2  ;;  %v572_v29 = vadd.f32 %v1614_v12, %v1893_v21 }
 0x11b   :  { %768 = vrot.lane.b32.xlu0 %v1667_v37, %s1063_s26 }
 0x11c   :  { %v474_v40 = vpop.permute.xlu1 %473  ;;  %v1907_v50 = vpop.permute.xlu2 %513 }
 0x11d   :  { %v462_v34 = vpop.permute.xlu0 %461  ;;  %v481_v41 = vsel %vm151_vm2, %v474_v40, %v476_v59 }
 0x11e   :  { %v464_v46 = vsel %vm151_vm2, %v460_v60, %v462_v34  ;;  %v472_v49 = vadd.f32 %v462_v34, %v1742_v7  ;;  %v487_v2 = vadd.f32 %v481_v41, %v1789_v52  ;;  %v659_v7 = vrot.slane %v2203_v16, 2 }
 0x11f   :  { %v1918_v37 = vadd.f32 %v464_v46, %v1751_v61  ;;  %v663_v61 = vsel %vm557_vm3, %v661_v57, %v662_v33  ;;  %v653_v16 = vmul.f32 %v1727_v56, %v2210_v39 }
 0x120   :  { %v1922_v22 = vadd.f32 %v1722_v24, %v487_v2  ;;  %v665_v46 = vsel %vm557_vm3, %v659_v7, %v664_v58 }
 0x122   :  { %786 = vrot.lane.b32.xlu1 %v1714_v55, %s1063_s26  ;;  %788 = vrot.lane.b32.xlu2 %v1717_v53, %s1063_s26  ;;  %v660_v55 = vsel %vm557_vm3, %v658_v0, %v659_v7 }
 0x123   :  { %784 = vrot.lane.b32.xlu0 %v1722_v24, %s1063_s26 }
 0x124   :  { %v480_v30 = vpop.permute.xlu1 %479  ;;  %v530_v63 = vpop.permute.xlu2 %529 }
 0x125   :  { %v478_v18 = vpop.permute.xlu0 %477  ;;  %v490_v52 = vadd.f32 %v480_v30, %v1652_v36  ;;  %v542_v60 = vadd.f32 %v530_v63, %v452_v11  ;;  %v666_v36 = vrot.slane %v653_v16, 2 }
 0x126   :  { %v482_v59 = vsel %vm151_vm2, %v478_v18, %v480_v30 }
 0x127   :  { %v1936_v8 = vadd.f32 %v482_v59, %v1784_v13  ;;  %v1941_v24 = vadd.f32 %v2211_v51, %v490_v52  ;;  %v1943_v20 = vadd.f32 %v663_v61, %v542_v60  ;;  %v667_v41 = vsel %vm557_vm3, %v662_v33, %v666_v36 }
 0x12a   :  { %748 = vrot.lane.b32.xlu1 %v660_v55, %s1062_s15  ;;  %750 = vrot.lane.b32.xlu2 %v663_v61, %s1062_s15 }
 0x12b   :  { %790 = vrot.lane.b32.xlu0 %v2211_v51, %s1063_s26 }
 0x12c   :  { %v496_v13 = vpop.permute.xlu1 %495  ;;  %v677_v11 = vpop.permute.xlu2 %676 }
 0x12d   :  { %v494_v56 = vpop.permute.xlu0 %493  ;;  %v500_v32 = vsel %vm151_vm2, %v496_v13, %v498_v48 }
 0x12e   :  { %v499_v40 = vsel %vm151_vm2, %v1872_v28, %v494_v56  ;;  %v1955_v42 = vadd.f32 %v494_v56, %v1812_v14  ;;  %v507_v27 = vadd.f32 %v500_v32, %v1846_v35  ;;  %v575_v14 = vadd.f32 %v1661_v25, %v472_v49 }
 0x12f   :  { %v1959_v34 = vadd.f32 %v499_v40, %v1818_v9  ;;  %v2213_v9 = vld [vmem:[#allocation7_spill] sm:$0xff] }
 0x130   :  { %v1964_v2 = vadd.f32 %v1799_v47, %v507_v27 }
 0x132   :  { %754 = vrot.lane.b32.xlu1 %v667_v41, %s1062_s15  ;;  %838 = vrot.lane.b32.xlu2 %v660_v55, %s1063_s26 }
 0x133   :  { %752 = vrot.lane.b32.xlu0 %v665_v46, %s1062_s15  ;;  %s1009_s15 = sshll.u32 %s1064_s1, 4  ;;  %s1010_s15 = int_to_ptr.vmem [resolvable:$true] %s1009_s15 }
 0x134   :  { %v512_v28 = vpop.permute.xlu1 %511  ;;  %v683_v35 = vpop.permute.xlu2 %682 }
 0x135   :  { %v510_v48 = vpop.permute.xlu0 %509  ;;  %v524_v3 = vadd.f32 %v512_v28, %v2213_v9  ;;  %v1971_v57 = vadd.f32 %v683_v35, %v575_v14 }
 0x136   :  { %v517_v33 = vsel %vm151_vm2, %v510_v48, %v512_v28 }
 0x137   :  { %v523_v47 = vadd.f32 %v517_v33, %v1844_v45  ;;  %v647_v0 = vadd.f32 %v1827_v5, %v524_v3 }
 0x13a   :  { %842 = vrot.lane.b32.xlu1 %v665_v46, %s1063_s26  ;;  %844 = vrot.lane.b32.xlu2 %v667_v41, %s1063_s26 }
 0x13b   :  { %840 = vrot.lane.b32.xlu0 %v663_v61, %s1063_s26 }
 0x13c   :  { %v528_v25 = vpop.permute.xlu1 %527  ;;  %v699_v49 = vpop.permute.xlu2 %698 }
 0x13d   :  { %v516_v7 = vpop.permute.xlu0 %515  ;;  %v535_v30 = vsel %vm151_vm2, %v528_v25, %v530_v63 }
 0x13e   :  { %v518_v18 = vsel %vm151_vm2, %v1907_v50, %v516_v7  ;;  %v526_v52 = vadd.f32 %v516_v7, %v1855_v15  ;;  %v541_v45 = vadd.f32 %v535_v30, %v1882_v19 }
 0x13f   :  { %v1985_v5 = vadd.f32 %v518_v18, %v1859_v6  ;;  %v574_v6 = vadd.f32 %v1658_v44, %v1918_v37 }
 0x140   :  { %v1987_v60 = vadd.f32 %v660_v55, %v541_v45  ;;  %v620_v45 = vadd.f32 %v1754_v10, %v1959_v34 }
 0x144   :  { %v534_v59 = vpop.permute.xlu1 %533  ;;  %v715_v39 = vpop.permute.xlu2 %714 }
 0x145   :  { %v532_v61 = vpop.permute.xlu0 %531  ;;  %v544_v16 = vadd.f32 %v534_v59, %v1814_v54 }
 0x146   :  { %v536_v51 = vsel %vm151_vm2, %v532_v61, %v534_v59  ;;  %v646_v59 = vadd.f32 %v1792_v26, %v523_v47  ;;  %v648_v47 = vadd.f32 %v1821_v62, %v1985_v5 }
 0x147   :  { %v543_v63 = vadd.f32 %v536_v51, %v1880_v38  ;;  %v1992_v4 = vadd.f32 %v667_v41, %v544_v16 }
 0x149   :  { %v1994_v50 = vadd.f32 %v665_v46, %v543_v63 }
 0x14c   :  { %v681_v15 = vpop.permute.xlu1 %680  ;;  %v731_v19 = vpop.permute.xlu2 %730 }
 0x14d   :  { %v679_v55 = vpop.permute.xlu0 %678  ;;  %v685_v36 = vsel %vm44_vm0, %v681_v15, %v683_v35 }
 0x14e   :  { %v684_v54 = vsel %vm44_vm0, %v677_v11, %v679_v55  ;;  %v2003_v13 = vadd.f32 %v679_v55, %v1896_v43  ;;  %v2005_v38 = vadd.f32 %v685_v36, %v574_v6  ;;  %v596_v43 = vadd.f32 %v1717_v53, %v1936_v8 }
 0x14f   :  { %v2007_v58 = vadd.f32 %v684_v54, %v572_v29 }
 0x154   :  { %v697_v56 = vpop.permute.xlu1 %696  ;;  %v737_v40 = vpop.permute.xlu2 %736 }
 0x155   :  { %v695_v32 = vpop.permute.xlu0 %694  ;;  %v2010_v44 = vadd.f32 %v697_v56, %v1862_v23 }
 0x156   :  { %v702_v37 = vsel %vm44_vm0, %v695_v32, %v697_v56 }
 0x157   :  { %v2014_v12 = vadd.f32 %v702_v37, %v1922_v22  ;;  %v621_v22 = vadd.f32 %v1757_v1, %v1955_v42 }
 0x159   :  { %v727_v3 = vadd.f32 %v715_v39, %v621_v22 }
 0x15c   :  { %v713_v21 = vpop.permute.xlu1 %712  ;;  %v807_v46 = vpop.permute.xlu2 %806 }
 0x15d   :  { %v2016_v11 = vpop.permute.xlu0 %700 }
 0x15e   :  { %v703_v27 = vsel %vm44_vm0, %v699_v49, %v2016_v11  ;;  %v720_v49 = vsel %vm44_vm0, %v713_v21, %v715_v39  ;;  %v649_v39 = vadd.f32 %v1824_v17, %v526_v52 }
 0x15f   :  { %v2022_v41 = vadd.f32 %v703_v27, %v596_v43  ;;  %v726_v1 = vadd.f32 %v720_v49, %v620_v45 }
 0x160   :  { %v747_v34 = vadd.f32 %v737_v40, %v649_v39 }
 0x164   :  { %v719_v23 = vpop.permute.xlu1 %718  ;;  %v823_v28 = vpop.permute.xlu2 %822 }
 0x165   :  { %v717_v14 = vpop.permute.xlu0 %716  ;;  %v729_v26 = vadd.f32 %v719_v23, %v1899_v31 }
 0x16c   :  { %v735_v35 = vpop.permute.xlu1 %734  ;;  %v767_v33 = vpop.permute.xlu2 %766 }
 0x16d   :  { %v733_v48 = vpop.permute.xlu0 %732  ;;  %v739_v10 = vsel %vm44_vm0, %v735_v35, %v737_v40 }
 0x16e   :  { %v745_v9 = vadd.f32 %v733_v48, %v647_v0  ;;  %v738_v18 = vsel %vm44_vm0, %v731_v19, %v733_v48  ;;  %v721_v19 = vsel %vm44_vm0, %v717_v14, %v719_v23  ;;  %v746_v56 = vadd.f32 %v739_v10, %v648_v47 }
 0x16f   :  { %v744_v42 = vadd.f32 %v738_v18, %v646_v59  ;;  %v728_v29 = vadd.f32 %v721_v19, %v1964_v2 }
 0x170   :  { %v835_v7 = vadd.f32 %v823_v28, %v745_v9 }
 0x174   :  { %v805_v25 = vpop.permute.xlu1 %804  ;;  %v773_v15 = vpop.permute.xlu2 %772 }
 0x175   :  { %v803_v53 = vpop.permute.xlu0 %802  ;;  %v817_v8 = vadd.f32 %v805_v25, %v727_v3  ;;  %v783_v32 = vadd.f32 %v773_v15, %v1971_v57 }
 0x176   :  { %v810_v61 = vsel %vm151_vm2, %v803_v53, %v805_v25 }
 0x177   :  { %v901_v30 = vadd.f32 %v835_v7, %v817_v8  ;;  %v816_v63 = vadd.f32 %v810_v61, %v726_v1  ;;  %v863_v23 = vmul.f32 %v783_v32, %v783_v32 }
 0x179   :  { %v905_v9 = vmul.f32 9.0, %v901_v30 }
 0x17c   :  { %v821_v0 = vpop.permute.xlu1 %820  ;;  %v789_v31 = vpop.permute.xlu2 %788 }
 0x17d   :  { %v809_v16 = vpop.permute.xlu0 %808  ;;  %v828_v51 = vsel %vm151_vm2, %v821_v0, %v823_v28 }
 0x17e   :  { %v834_v6 = vadd.f32 %v828_v51, %v744_v42  ;;  %v811_v36 = vsel %vm151_vm2, %v807_v46, %v809_v16  ;;  %v819_v37 = vadd.f32 %v809_v16, %v729_v26 }
 0x17f   :  { %v818_v43 = vadd.f32 %v811_v36, %v728_v29 }
 0x180   :  { %v900_v55 = vadd.f32 %v834_v6, %v816_v63 }
 0x182   :  { %v904_v53 = vmul.f32 9.0, %v900_v55  ;;  %v711_v55 = vadd.f32 %v2016_v11, %v1941_v24 }
 0x184   :  { %v827_v54 = vpop.permute.xlu1 %826  ;;  %v751_v49 = vpop.permute.xlu2 %750 }
 0x185   :  { %v825_v17 = vpop.permute.xlu0 %824  ;;  %v837_v52 = vadd.f32 %v827_v54, %v747_v34 }
 0x186   :  { %v829_v21 = vsel %vm151_vm2, %v825_v17, %v827_v54 }
 0x187   :  { %v836_v40 = vadd.f32 %v829_v21, %v746_v56  ;;  %v903_v27 = vadd.f32 %v837_v52, %v819_v37 }
 0x189   :  { %v902_v14 = vadd.f32 %v836_v40, %v818_v43  ;;  %v907_v62 = vmul.f32 9.0, %v903_v27 }
 0x18b   :  { %v911_v5 = vsub.f32 %v907_v62, %v863_v23  ;;  %v906_v3 = vmul.f32 9.0, %v902_v14 }
 0x18c   :  { %v771_v2 = vpop.permute.xlu1 %770  ;;  %v2051_v63 = vpop.permute.xlu2 %838 }
 0x18d   :  { %v769_v28 = vpop.permute.xlu0 %768  ;;  %v775_v46 = vsel %vm151_vm2, %v771_v2, %v773_v15 }
 0x18e   :  { %v774_v35 = vsel %vm151_vm2, %v767_v33, %v769_v28  ;;  %v781_v57 = vadd.f32 %v769_v28, %v2003_v13  ;;  %v782_v48 = vadd.f32 %v775_v46, %v2005_v38 }
 0x18f   :  { %v780_v22 = vadd.f32 %v774_v35, %v2007_v58 }
 0x190   :  { %v861_v25 = vmul.f32 %v781_v57, %v781_v57  ;;  %v862_v7 = vmul.f32 %v782_v48, %v782_v48 }
 0x191   :  { %v860_v8 = vmul.f32 %v780_v22, %v780_v22 }
 0x192   :  { %v909_v18 = vsub.f32 %v905_v9, %v861_v25  ;;  %v910_v45 = vsub.f32 %v906_v3, %v862_v7 }
 0x193   :  { %v908_v59 = vsub.f32 %v904_v53, %v860_v8 }
 0x194   :  { %v787_v61 = vpop.permute.xlu1 %786  ;;  %v845_v46 = vpop.permute.xlu2 %844 }
 0x195   :  { %v785_v1 = vpop.permute.xlu0 %784  ;;  %v799_v33 = vadd.f32 %v787_v61, %v2010_v44 }
 0x196   :  { %v792_v13 = vsel %vm151_vm2, %v785_v1, %v787_v61 }
 0x197   :  { %v798_v38 = vadd.f32 %v792_v13, %v2014_v12  ;;  %v857_v42 = vmul.f32 %v799_v33, %v781_v57  ;;  %v865_v58 = vmul.f32 %v799_v33, %v799_v33 }
 0x199   :  { %v856_v30 = vmul.f32 %v798_v38, %v780_v22  ;;  %v864_v0 = vmul.f32 %v798_v38, %v798_v38  ;;  %v893_v16 = vadd.f32 %v865_v58, %v861_v25  ;;  %v913_v51 = vsub.f32 %v909_v18, %v865_v58 }
 0x19a   :  { %v2060_v54 = vadd.f32 %v857_v42, %v857_v42 }
 0x19b   :  { %v892_v15 = vadd.f32 %v864_v0, %v860_v8  ;;  %v897_v6 = vadd.f32 0.0081, %v893_v16  ;;  %v912_v39 = vsub.f32 %v908_v59, %v864_v0  ;;  %v917_v19 = vadd.f32 0.0729, %v913_v51 }
 0x19c   :  { %v749_v44 = vpop.permute.xlu1 %748  ;;  %v2058_v36 = vadd.f32 %v856_v30, %v856_v30  ;;  %v2069_v27 = vadd.f32 0.0081, %v2060_v54 }
 0x19d   :  { %v896_v10 = vadd.f32 0.0081, %v892_v15  ;;  %v791_v34 = vpop.permute.xlu0 %790  ;;  %v916_v26 = vadd.f32 0.0729, %v912_v39  ;;  %v2055_v12 = vmul.f32 %v917_v19, %v897_v6  ;;  %v756_v40 = vsel %vm44_vm0, %v749_v44, %v751_v49 }
 0x19e   :  { %v793_v47 = vsel %vm151_vm2, %v789_v31, %v791_v34  ;;  %v801_v29 = vadd.f32 %v791_v34, %v711_v55  ;;  %v2073_v62 = vadd.f32 0.0081, %v2058_v36 }
 0x19f   :  { %v800_v56 = vadd.f32 %v793_v47, %v2022_v41  ;;  %v2063_v37 = vmul.f32 %v916_v26, %v896_v10  ;;  %1028 = vrcp.f32 %v2055_v12  ;;  %v763_v41 = vadd.f32 %v751_v49, %v1943_v20 }
 0x1a0   :  { %v859_v24 = vmul.f32 %v801_v29, %v783_v32  ;;  %v867_v11 = vmul.f32 %v801_v29, %v801_v29  ;;  %v948_v25 = vand.u32 2147483647, %v2055_v12  ;;  %vm944_vm5 = vweird.f32 %v2055_v12 }
 0x1a1   :  { %v858_v17 = vmul.f32 %v800_v56, %v782_v48  ;;  %v866_v52 = vmul.f32 %v800_v56, %v800_v56  ;;  %1030 = vrcp.f32 %v2063_v37  ;;  %v933_v18 = vand.u32 2147483647, %v2063_v37 }
 0x1a2   :  { %v895_v21 = vadd.f32 %v867_v11, %v863_v23  ;;  %v915_v43 = vsub.f32 %v911_v5, %v867_v11  ;;  %v762_v23 = vadd.f32 %v756_v40, %v1987_v60  ;;  %v871_v3 = vadd.f32 %v859_v24, %v859_v24 }
 0x1a3   :  { %v894_v31 = vadd.f32 %v866_v52, %v862_v7  ;;  %v914_v14 = vsub.f32 %v910_v45, %v866_v52  ;;  %v2079_v9 = vadd.f32 %v858_v17, %v858_v17  ;;  %v935_v45 = vand.u32 2147483648, %v2063_v37 }
 0x1a4   :  { %v899_v32 = vadd.f32 0.0081, %v895_v21  ;;  %v919_v2 = vadd.f32 0.0729, %v915_v43  ;;  %v755_v28 = vpop.permute.xlu1 %754  ;;  %vm929_vm4 = vweird.f32 %v2063_v37  ;;  %v875_v33 = vadd.f32 0.0081, %v871_v3 }
 0x1a5   :  { %v898_v35 = vadd.f32 0.0081, %v894_v31  ;;  %v918_v57 = vadd.f32 0.0729, %v914_v14  ;;  %v753_v5 = vpop.permute.xlu0 %752  ;;  %v765_v48 = vadd.f32 %v755_v28, %v1992_v4  ;;  %v2077_v22 = vpop.eup %1028  ;;  %v2101_v1 = vadd.f32 0.0081, %v2079_v9 }
 0x1a6   :  { %v2081_v20 = vmul.f32 %v919_v2, %v899_v32  ;;  %v757_v53 = vsel %vm44_vm0, %v753_v5, %v755_v28  ;;  %v940_v60 = vmul.f32 %v2077_v22, %v2055_v12  ;;  %vm2106_vm7 = vcmp.eq.f32.partialorder %v933_v18, 8.507059e+37 }
 0x1a7   :  { %v2084_v7 = vmul.f32 %v918_v57, %v898_v35  ;;  %v855_v8 = vadd.f32 %v845_v46, %v765_v48  ;;  %v2089_v49 = vpop.eup %1030  ;;  %v764_v13 = vadd.f32 %v757_v53, %v1994_v50  ;;  %v936_v51 = vor.u32 1.1754944e-38, %v935_v45 }
 0x1a8   :  { %1032 = vrcp.f32 %v2081_v20  ;;  %v980_v4 = vand.u32 2147483648, %v2081_v20  ;;  %v925_v59 = vmul.f32 %v2089_v49, %v2063_v37  ;;  %v978_v38 = vand.u32 2147483647, %v2081_v20 }
 0x1a9   :  { %1034 = vrcp.f32 %v2084_v7  ;;  %v879_v61 = vmul.f32 18.0, %v855_v8  ;;  %vm930_vm6 = vweird.f32 %v2089_v49  ;;  %v941_v30 = vsub.f32 1.0, %v940_v60 }
 0x1aa   :  { %v926_v58 = vsub.f32 1.0, %v925_v59  ;;  %v981_v0 = vor.u32 1.1754944e-38, %v980_v4  ;;  %vm945_vm8 = vweird.f32 %v2077_v22  ;;  %vm974_vm9 = vweird.f32 %v2081_v20  ;;  %vm2135_vm13 = vmor %vm929_vm4, %vm930_vm6 }
 0x1ab   :  { %v883_v42 = vsub.f32 %v879_v61, %v871_v3  ;;  %v942_v39 = vmul.f32 %v2077_v22, %v941_v30  ;;  %vm2114_vm10 = vcmp.eq.f32.partialorder %v948_v25, 8.507059e+37  ;;  %v950_v47 = vand.u32 2147483648, %v2055_v12  ;;  %vm2148_vm14 = vmor %vm944_vm5, %vm945_vm8 }
 0x1ac   :  { %v843_v15 = vpop.permute.xlu1 %842  ;;  %v927_v55 = vmul.f32 %v2089_v49, %v926_v58  ;;  %vm2123_vm11 = vcmp.eq.f32.partialorder %v978_v38, 8.507059e+37  ;;  %vm959_vm12 = vweird.f32 %v2084_v7  ;;  %v963_v2 = vand.u32 2147483647, %v2084_v7 }
 0x1ad   :  { %v887_v6 = vadd.f32 0.0729, %v883_v42  ;;  %v841_v50 = vpop.permute.xlu0 %840  ;;  %v847_v44 = vsel %vm151_vm2, %v843_v15, %v845_v46  ;;  %v943_v40 = vadd.f32 %v2077_v22, %v942_v39  ;;  %v951_v37 = vor.u32 1.1754944e-38, %v950_v47 }
 0x1ae   :  { %v1033_v10 = vpop.eup %1032  ;;  %v846_v34 = vsel %vm151_vm2, %v2051_v63, %v841_v50  ;;  %v853_v26 = vadd.f32 %v841_v50, %v763_v41  ;;  %v854_v29 = vadd.f32 %v847_v44, %v764_v13  ;;  %v928_v63 = vadd.f32 %v2089_v49, %v927_v55 }
 0x1af   :  { %v1035_v56 = vpop.eup %1034  ;;  %v970_v24 = vmul.f32 %v1033_v10, %v2081_v20  ;;  %v891_v17 = vmul.f32 %v887_v6, %v875_v33  ;;  %v852_v52 = vadd.f32 %v846_v34, %v762_v23  ;;  %vm975_vm15 = vweird.f32 %v1033_v10 }
 0x1b0   :  { %v955_v21 = vmul.f32 %v1035_v56, %v2084_v7  ;;  %v877_v43 = vmul.f32 18.0, %v853_v26  ;;  %v878_v32 = vmul.f32 18.0, %v854_v29  ;;  %v932_v46 = vsel %vm2135_vm13, %v2089_v49, %v928_v63  ;;  %vm976_vm1 = vmor %vm974_vm9, %vm975_vm15 }
 0x1b1   :  { %v971_v31 = vsub.f32 1.0, %v970_v24  ;;  %v876_v14 = vmul.f32 18.0, %v852_v52  ;;  %vm960_vm0 = vweird.f32 %v1035_v56  ;;  %v937_v8 = vsel %vm2106_vm7, %v936_v51, %v932_v46 }
 0x1b2   :  { %v881_v28 = vsub.f32 %v877_v43, %v2060_v54  ;;  %v956_v57 = vsub.f32 1.0, %v955_v21  ;;  %v947_v54 = vsel %vm2148_vm14, %v2077_v22, %v943_v40  ;;  %v882_v3 = vsub.f32 %v878_v32, %v2079_v9  ;;  %vm961_vm2 = vmor %vm959_vm12, %vm960_vm0 }
 0x1b3   :  { %v972_v23 = vmul.f32 %v1033_v10, %v971_v31  ;;  %v880_v5 = vsub.f32 %v876_v14, %v2058_v36  ;;  %v965_v60 = vand.u32 2147483648, %v2084_v7  ;;  %v952_v22 = vsel %vm2114_vm10, %v951_v37, %v947_v54 }
 0x1b4   :  { %v885_v48 = vadd.f32 0.0729, %v881_v28  ;;  %v957_v25 = vmul.f32 %v1035_v56, %v956_v57  ;;  %v886_v49 = vadd.f32 0.0729, %v882_v3  ;;  %vm964_vm3 = vcmp.eq.f32.partialorder %v963_v2, 8.507059e+37 }
 0x1b5   :  { %v973_v12 = vadd.f32 %v1033_v10, %v972_v23  ;;  %v884_v53 = vadd.f32 0.0729, %v880_v5  ;;  %v966_v45 = vor.u32 1.1754944e-38, %v965_v60  ;;  %vm1001_vm4 = vcmask 130048  }
 0x1b6   :  { %v889_v36 = vmul.f32 %v885_v48, %v2069_v27  ;;  %v958_v4 = vadd.f32 %v1035_v56, %v957_v25  ;;  %v890_v61 = vmul.f32 %v886_v49, %v2101_v1 }
 0x1b7   :  { %v977_v9 = vsel %vm976_vm1, %v1033_v10, %v973_v12  ;;  %v888_v18 = vmul.f32 %v884_v53, %v2073_v62 }
 0x1b8   :  { %v982_v59 = vsel %vm2123_vm11, %v981_v0, %v977_v9  ;;  %v953_v20 = vmul.f32 %v952_v22, %v889_v36  ;;  %v962_v27 = vsel %vm961_vm2, %v1035_v56, %v958_v4 }
 0x1b9   :  { %v983_v33 = vmul.f32 %v982_v59, %v891_v17  ;;  %v938_v13 = vmul.f32 %v937_v8, %v888_v18  ;;  %v967_v38 = vsel %vm964_vm3, %v966_v45, %v962_v27 }
 0x1ba   :  { %v985_v42 = vmul.f32 0.5, %v953_v20  ;;  %v968_v58 = vmul.f32 %v967_v38, %v890_v61 }
 0x1bb   :  { %v987_v30 = vmul.f32 0.5, %v983_v33  ;;  %v984_v16 = vmul.f32 0.5, %v938_v13 }
 0x1bc   :  { %v989_v62 = vsub.f32 0.5, %v985_v42  ;;  %v986_v51 = vmul.f32 0.5, %v968_v58 }
 0x1bd   :  { %v991_v7 = vsub.f32 0.5, %v987_v30  ;;  %v988_v15 = vsub.f32 0.5, %v984_v16 }
 0x1be   :  { %v993_v6 = vmax.f32 %v989_v62, 0.0  ;;  %v990_v50 = vsub.f32 0.5, %v986_v51 }
 0x1bf   :  { %v995_v55 = vmax.f32 %v991_v7, 0.0  ;;  %v992_v0 = vmax.f32 %v988_v15, 0.0 }
 0x1c0   :  { %v997_v1 = vmin.f32 %v993_v6, 1.0  ;;  %v994_v39 = vmax.f32 %v990_v50, 0.0 }
 0x1c1   :  { %v999_v19 = vmin.f32 %v995_v55, 1.0  ;;  %v996_v44 = vmin.f32 %v992_v0, 1.0 }
 0x1c2   :  { %1002 = vst.msk [vmem:[#allocation2 + $0x8] sm:$0xff] %vm1001_vm4, %v997_v1  ;;  %v998_v10 = vmin.f32 %v994_v39, 1.0 }
 0x1c3   :  { %1004 = vst.msk [vmem:[#allocation2 + $0x18] sm:$0xff] %vm1001_vm4, %v999_v19 }
 0x1c4   :  { %1000 = vst [vmem:[#allocation2] sm:$0xff] %v996_v44 }
 0x1c5   :  { %1003 = vst [vmem:[#allocation2 + $0x10] sm:$0xff] %v998_v10 }
 0x1c6   :  { %1017 = dma.vmem_to_hbm [thread:$0]  %s1010_s15, 512, %s1012_s5, [#allocation3], %s1065_s6, %s1065_s6, %s1066_s7  }
 0x1c7   :  { %1060 = dma.done.wait [#allocation3], 512  }
 0x1c8   :  { %1061 = vsyncadd [#allocation3], 4294966784 }
 0x1c9   :  { %1022 = vsyncpa [#allocation3], 1 }

</bundles_post_ra>
